<compile_context>
chip_gen: v6e
topology: v6e:2x2x1
jax: 0.10.0
libtpu: 0.0.40
codegen_flags: <defaults>
</compile_context>

<pallas_src>
import jax
import jax.numpy as jnp
from jax.experimental import pallas as pl
from jax.experimental.pallas import tpu as pltpu


_TARGET_BLOCK_BYTES = 4 << 20   # ~4 MiB/block: amortizes the ~0.35 us/step
                                # overhead on all generations while keeping
                                # 2 arrays x 2 buffers x block well under VMEM.
_VMEM_LIMIT_BYTES = 32 << 20    # explicit scoped-VMEM limit: safe on v5e/v6e
                                # (128 MiB physical) and v7x (64 MiB physical).


def _chomp_copy_kernel(x_ref, o_ref):
    # Input and output blocks share the same (TR, TL) window of the kept
    # prefix, so the body is a straight lane-dense VMEM copy. (The final
    # ragged L tile's *input* block may extend a little past L_out — clamped
    # at L — which is harmless; the output store is masked at the edge.)
    o_ref[...] = x_ref[...]


def _pick_tiles(rows: int, l_out: int, dtype) -> tuple[int, int]:
    itemsize = jnp.dtype(dtype).itemsize
    # Sublane packing: 8 rows f32, 16 rows bf16, 32 rows int8.
    pack = 8 * max(1, 4 // itemsize)

    # Lane (last-dim) tile: always a multiple of 128 so the layout rule holds
    # for BOTH the (rows, L) input view and the (rows, L_out) output, and
    # stores stay unmasked except at the single ragged edge. Prefer covering
    # the whole kept length in one tile when a pack-of-rows block fits budget.
    tl_full = 128 * pl.cdiv(l_out, 128)
    if tl_full * pack * itemsize <= _TARGET_BLOCK_BYTES:
        tl = tl_full
    else:
        tl = max(128, ((_TARGET_BLOCK_BYTES // (pack * itemsize)) // 128) * 128)
        tl = min(tl, tl_full)

    # Row tile: multiple of the sublane packing (or the full row extent),
    # as large as the ~4 MiB block target allows.
    max_tr = max(pack, ((_TARGET_BLOCK_BYTES // (tl * itemsize)) // pack) * pack)
    tr = rows if rows <= max_tr else max_tr

    # Megacore: if everything landed in a single block but there is enough
    # work for two tiles, split the row axis so both TensorCores get work.
    if pl.cdiv(rows, tr) == 1 and pl.cdiv(l_out, tl) == 1 and rows >= 2 * pack:
        tr = pack * pl.cdiv(pl.cdiv(rows, 2), pack)

    return tr, tl


def chomp1d(x: jax.Array, chomp_size: int) -> jax.Array:
    """Pallas equivalent of Chomp1d(chomp_size).forward(x) for x of shape (N, C, L)."""
    assert x.ndim == 3, "expected (N, C, L)"
    n, c, l = x.shape
    assert 0 <= chomp_size < l, "chomp_size must be in [0, L)"

    if chomp_size == 0:
        # Python/PyTorch `x[:, :, :-0]` is an *empty* last axis; match exactly.
        # (Real TCN usage always has chomp_size > 0.)
        return x[:, :, :0]

    l_out = l - chomp_size
    rows = n * c
    itemsize = jnp.dtype(x.dtype).itemsize

    # Free row-major reshape: lets the row tile span (N, C) jointly so small-C
    # inputs still get large blocks, and drops one grid axis.
    x2 = x.reshape(rows, l)

    tr, tl = _pick_tiles(rows, l_out, x.dtype)
    grid = (pl.cdiv(rows, tr), pl.cdiv(l_out, tl))

    # Same block shape + index_map for input and output; Pallas masks the
    # ragged edges of the last row / L_out tiles on writeback.
    spec = pl.BlockSpec((tr, tl), lambda ri, li: (ri, li))

    out2 = pl.pallas_call(
        _chomp_copy_kernel,
        out_shape=jax.ShapeDtypeStruct((rows, l_out), x.dtype),
        grid=grid,
        in_specs=[spec],
        out_specs=spec,
        compiler_params=pltpu.CompilerParams(
            dimension_semantics=("parallel", "parallel"),
            vmem_limit_bytes=_VMEM_LIMIT_BYTES,
        ),
        cost_estimate=pl.CostEstimate(
            flops=0,
            transcendentals=0,
            bytes_accessed=2 * rows * l_out * itemsize,
        ),
    )(x2)

    return out2.reshape(n, c, l_out)


if __name__ == "__main__":
    key = jax.random.PRNGKey(0)
    k0, k1 = jax.random.split(key)

    # Toy shape consistent with the TCN encoder activation: (N=2, C=4, L=16),
    # chomp_size=3 (Chomp1d has no weights).
    x = jax.random.normal(k0, (2, 4, 16), dtype=jnp.float32)
    out = jax.block_until_ready(chomp1d(x, 3))
    ref = x[:, :, :-3]
    assert out.shape == ref.shape, (out.shape, ref.shape)
    assert jnp.array_equal(out, ref), "mismatch vs reference slice (small case)"

    # Larger (still small) case that exercises the flattened-row tiling,
    # megacore row split, and the single-L-tile fast path with a ragged edge.
    x2 = jax.random.normal(k1, (2, 64, 1200), dtype=jnp.float32)
    out2 = jax.block_until_ready(chomp1d(x2, 7))
    ref2 = x2[:, :, :-7]
    assert out2.shape == ref2.shape, (out2.shape, ref2.shape)
    assert jnp.array_equal(out2, ref2), "mismatch vs reference slice (tiled case)"

    print("KERNEL_OK")
</pallas_src>

<mosaic_0001>
module attributes {stable_mosaic.version = 11 : i64} {
  func.func @_chomp_copy_kernel(%arg0: i32, %arg1: i32, %arg2: memref<8x128xf32, #tpu.memory_space<vmem>>, %arg3: memref<8x128xf32, #tpu.memory_space<vmem>>) attributes {dimension_semantics = [#tpu.dimension_semantics<parallel>, #tpu.dimension_semantics<parallel>], iteration_bounds = array<i64: 1, 1>, scalar_prefetch = 0 : i64, scratch_operands = 0 : i64, tpu.core_type = #tpu.core_type<tc>, window_params = [{transform_indices = @transform_0, window_bounds = array<i64: 8, 128>}, {transform_indices = @transform_1, window_bounds = array<i64: 8, 128>}]} {
    %c0 = arith.constant 0 : index
    %c0_0 = arith.constant 0 : index
    %0 = vector.load %arg2[%c0, %c0_0] : memref<8x128xf32, #tpu.memory_space<vmem>>, vector<8x128xf32>
    %c0_1 = arith.constant 0 : index
    %c0_2 = arith.constant 0 : index
    %1 = vector.load %arg3[%c0_1, %c0_2] : memref<8x128xf32, #tpu.memory_space<vmem>>, vector<8x128xf32>
    tpu.vector_store %arg3[%c0_1, %c0_2], %0 {strides = array<i32>} : memref<8x128xf32, #tpu.memory_space<vmem>>, vector<8x128xf32>,
    return
  }
  func.func @transform_0(%arg0: i32, %arg1: i32) -> (i32, i32) {
    %c0_i32 = arith.constant 0 : i32
    return %arg0, %arg1 : i32, i32
  }
  func.func @transform_1(%arg0: i32, %arg1: i32) -> (i32, i32) {
    %c0_i32 = arith.constant 0 : i32
    return %arg0, %arg1 : i32, i32
  }
}

</mosaic_0001>

<bundles_post_ra>
// kernel: tpu_custom_call.1
= control target key start
LH: loop header
LB: loop body
LE: loop exit
PB: predicated region body
PF: predicated region fallthrough
CT: control target
= control target key end

     0   :  { %6 = vsyncpa [#allocation3], 0  ;;  %s102_s0 = inlined_call_operand.hbm [shape: f32[8,16], index: 0, kind: input, shape index: {}]   ;;  %s103_s1 = inlined_call_operand.hbm [shape: f32[8,13], index: 1, kind: output, shape index: {}]  }
   0x1   :  { %7 = vsyncpa [#allocation4], 0  ;;  %s84_s6 = smov [#allocation2]  }
   0x2   :  { %s14_s7 = sshll.u32 %s84_s6, 4  ;;  %s15_s7 = int_to_ptr.vmem [resolvable:$true] %s14_s7 }
   0x3   :  { %s48_s8 = scalar_lea.vmem %s15_s7, 128  ;;  %p53_p1 = scmp.lt.s32.totalorder %s15_s7, %s15_s7 }
   0x4   :  { %p49_p0 = scmp.ne.s32.totalorder %s15_s7, %s48_s8  ;;  %p54_p2 = scmp.lt.s32.totalorder %s48_s8, %s48_s8 }
   0x6   :  { %p55_p3 = por %p54_p2, %p53_p1 }
   0x8   :  { %p56_p4 = pnand %p55_p3, %p49_p0 }
   0xa   :  { %59 = shalt.err (!%p56_p4)
}
   0xb   :  { %17 = dma.hbm_to_vmem [thread:$0]  %s102_s0, 128, %s15_s7, [#allocation3]  }
   0xc   :  { %80 = dma.done.wait [#allocation3], 128  }
   0xd   :  { %81 = vsyncadd [#allocation3], 4294967168  ;;  %s85_s11 = smov [#allocation5]   ;;  %v21_v0 = vld [vmem:[#allocation2] sm:$0xff] }
   0xe   :  { %s29_s12 = sshll.u32 %s85_s11, 4  ;;  %22 = vst [vmem:[#allocation5] sm:$0xff] %v21_v0  ;;  %s30_s12 = int_to_ptr.vmem [resolvable:$true] %s29_s12 }
   0xf   :  { %s60_s13 = scalar_lea.vmem %s30_s12, 128  ;;  %p65_p6 = scmp.lt.s32.totalorder %s30_s12, %s30_s12 }
  0x10   :  { %p61_p5 = scmp.ne.s32.totalorder %s30_s12, %s60_s13  ;;  %p66_p7 = scmp.lt.s32.totalorder %s60_s13, %s60_s13 }
  0x12   :  { %p67_p8 = por %p66_p7, %p65_p6 }
  0x14   :  { %p68_p9 = pnand %p67_p8, %p61_p5 }
  0x16   :  { %71 = shalt.err (!%p68_p9)
}
  0x17   :  { %32 = dma.vmem_to_hbm [thread:$0]  %s30_s12, 128, %s103_s1, [#allocation4]  }
  0x18   :  { %82 = dma.done.wait [#allocation4], 128  }
  0x19   :  { %83 = vsyncadd [#allocation4], 4294967168 }
  0x1a   :  { %36 = vsyncpa [#allocation3], 1 }
  0x1b   :  { %37 = vsyncpa [#allocation4], 1 }

</bundles_post_ra>
